<compile_context>
chip_gen: v7x
topology: tpu7x:2x2x1
jax: 0.10.0
libtpu: 0.0.40
codegen_flags: <defaults>
</compile_context>

<pallas_src>
import jax
import jax.numpy as jnp
from jax.experimental import pallas as pl
from jax.experimental.pallas import tpu as pltpu


_VMEM_LIMIT_BYTES = 32 * 1024 * 1024   # raise v5e's 16 MiB scoped default; safe on v6e/v7x
_TILE_BUDGET_BYTES = 10 << 20          # per-call working-set target, well under the limit
_LANES = 128


def _cdiv(a, b):
    return -(-a // b)


def _round_up(a, b):
    return _cdiv(a, b) * b


# ----------------------------------------------------------------------- JAX glue
def _im2col_nhwc(x, kh, kw, stride, pad):
    """Extract conv patches (bf16 in -> bf16 out).  Feature order is (kh, kw, Cin)."""
    n, h, w, c = x.shape
    xp = jnp.pad(x, ((0, 0), (pad, pad), (pad, pad), (0, 0)))
    hp, wp = h + 2 * pad, w + 2 * pad
    ho = (hp - kh) // stride + 1
    wo = (wp - kw) // stride + 1
    cols = []
    for i in range(kh):
        for j in range(kw):
            cols.append(
                xp[:, i:i + stride * (ho - 1) + 1:stride,
                      j:j + stride * (wo - 1) + 1:stride, :])
    patches = jnp.concatenate(cols, axis=-1)            # (N, Ho, Wo, kh*kw*C)
    return patches.reshape(n * ho * wo, kh * kw * c), ho, wo


def _plan_m(m, k, tn, out_bytes, bn_resident):
    """Pick the M tile so the real VMEM footprint (double-buffered bf16 patch
    tiles, bf16 weight block, f32 accumulator value, and the resident /
    double-buffered output) stays under the working-set budget."""
    def footprint(tm, steps):
        mp = tm * steps
        f = 2 * tm * k * 2               # double-buffered bf16 patch tile
        f += 2 * k * tn * 2              # bf16 weight block (conservatively 2x)
        f += tm * tn * 4                 # live f32 matmul accumulator
        if bn_resident:
            f += mp * tn * out_bytes     # whole-M resident staged output block
        else:
            f += 2 * tm * tn * out_bytes  # double-buffered output tile
        return f

    if footprint(m, 1) <= _TILE_BUDGET_BYTES:
        return m, 1
    tm = 2048
    while tm > 8 and footprint(tm, _cdiv(m, tm)) > _TILE_BUDGET_BYTES:
        tm //= 2
    tm = max(tm, 8)
    # TODO(synk): if even tm=8 does not fit (gigantic BN layers) switch to a
    # two-pass stats/apply split; unnecessary at PatchGAN sizes.
    return tm, _cdiv(m, tm)


def _pick_tn(coutp):
    """Lane-dense cout tile (128/256) for the BN path."""
    if coutp <= 256:
        return coutp
    return 256 if coutp % 256 == 0 else 128


# ------------------------------------------------------------------------ kernels
def _make_conv_bias_kernel(use_lrelu):
    """conv-as-matmul + bias (+ optional LeakyReLU); single store (bf16 or f32)."""
    def kernel(x_ref, w_ref, b_ref, o_ref):
        acc = jnp.dot(x_ref[...], w_ref[...], preferred_element_type=jnp.float32)
        acc = acc + b_ref[...]
        if use_lrelu:
            acc = jnp.where(acc >= 0, acc, 0.2 * acc)
        o_ref[...] = acc.astype(o_ref.dtype)
    return kernel


def _make_conv_bn_lrelu_kernel(m_true, tm, n_mt):
    """conv-as-matmul (no bias) + BatchNorm2d (training-mode batch stats, gamma=1,
    beta=0, eps=1e-5) + LeakyReLU(0.2), fully fused.

    Per-channel sum / sum-of-squares accumulate into VMEM scratch each grid step;
    the finalize only applies scale/shift + LeakyReLU.  Zero-padded M rows (when
    the M axis is tiled) contribute nothing to the sums, so dividing by the true
    m is exact.  All epilogue math is f32; only the store casts to o_ref.dtype.
    """
    inv_m = 1.0 / float(m_true)

    def kernel(x_ref, w_ref, o_ref, sum_ref, ssq_ref):
        i = pl.program_id(1)                       # M ("arbitrary") axis
        acc = jnp.dot(x_ref[...], w_ref[...], preferred_element_type=jnp.float32)

        @pl.when(i == 0)
        def _():
            sum_ref[...] = jnp.zeros_like(sum_ref)
            ssq_ref[...] = jnp.zeros_like(ssq_ref)

        sum_ref[...] += jnp.sum(acc, axis=0, keepdims=True)
        ssq_ref[...] += jnp.sum(acc * acc, axis=0, keepdims=True)

        def scale_shift():
            mean = sum_ref[...] * inv_m
            var = jnp.maximum(ssq_ref[...] * inv_m - mean * mean, 0.0)
            scale = jax.lax.rsqrt(var + 1e-5)
            return scale, -mean * scale

        if n_mt == 1:
            # Finalize straight from the in-register accumulator: single store,
            # no re-read of the output.
            scale, shift = scale_shift()
            z = acc * scale + shift
            o_ref[...] = jnp.where(z >= 0, z, 0.2 * z).astype(o_ref.dtype)
        else:
            # Stage the pre-normalized tile into the M-resident output block.
            o_ref[pl.ds(pl.multiple_of(i * tm, tm), tm), :] = acc.astype(o_ref.dtype)

            @pl.when(i == n_mt - 1)
            def _():
                scale, shift = scale_shift()
                for t in range(n_mt):              # static unroll
                    y = o_ref[t * tm:(t + 1) * tm, :].astype(jnp.float32)
                    z = y * scale + shift
                    o_ref[t * tm:(t + 1) * tm, :] = (
                        jnp.where(z >= 0, z, 0.2 * z).astype(o_ref.dtype))

    return kernel


# ---------------------------------------------------------------- pallas wrappers
def _conv_bias_layer(patches, wmat, bias, use_lrelu, out_dtype):
    m, k = patches.shape
    coutp = wmat.shape[1]
    out_bytes = jnp.dtype(out_dtype).itemsize
    tm, n_mt = _plan_m(m, k, coutp, out_bytes, bn_resident=False)

    return pl.pallas_call(
        _make_conv_bias_kernel(use_lrelu),
        out_shape=jax.ShapeDtypeStruct((m, coutp), out_dtype),
        grid=(n_mt,),
        in_specs=[
            pl.BlockSpec((tm, k), lambda i: (i, 0)),
            pl.BlockSpec((k, coutp), lambda i: (0, 0)),
            pl.BlockSpec((1, coutp), lambda i: (0, 0)),
        ],
        out_specs=pl.BlockSpec((tm, coutp), lambda i: (i, 0)),
        compiler_params=pltpu.CompilerParams(
            dimension_semantics=("parallel",),
            vmem_limit_bytes=_VMEM_LIMIT_BYTES),
    )(patches, wmat, bias)


def _conv_bn_lrelu_layer(patches, wmat, out_dtype):
    m, k = patches.shape
    coutp = wmat.shape[1]
    out_bytes = jnp.dtype(out_dtype).itemsize
    tn = _pick_tn(coutp)
    n_ct = coutp // tn
    tm, n_mt = _plan_m(m, k, tn, out_bytes, bn_resident=True)
    mp = tm * n_mt
    if mp != m:
        # Zero rows keep the batch statistics exact (they add nothing to the
        # per-channel sums); the caller slices them away.
        patches = jnp.pad(patches, ((0, mp - m), (0, 0)))

    return pl.pallas_call(
        _make_conv_bn_lrelu_kernel(m, tm, n_mt),
        out_shape=jax.ShapeDtypeStruct((mp, coutp), out_dtype),
        grid=(n_ct, n_mt),
        in_specs=[
            pl.BlockSpec((tm, k), lambda j, i: (i, 0)),
            pl.BlockSpec((k, tn), lambda j, i: (0, j)),
        ],
        out_specs=pl.BlockSpec((mp, tn), lambda j, i: (0, j)),
        scratch_shapes=[pltpu.VMEM((1, tn), jnp.float32),
                        pltpu.VMEM((1, tn), jnp.float32)],
        compiler_params=pltpu.CompilerParams(
            dimension_semantics=("parallel", "arbitrary"),
            vmem_limit_bytes=_VMEM_LIMIT_BYTES),
    )(patches, wmat)


def _conv_block(x_nhwc, w, b, stride, use_bn, use_lrelu, out_dtype):
    n = x_nhwc.shape[0]
    cout, cin, kh, kw = w.shape
    patches, ho, wo = _im2col_nhwc(x_nhwc, kh, kw, stride, 1)
    m = patches.shape[0]

    # torch weight (Cout, Cin, kh, kw) -> (kh*kw*Cin, Cout) matching patch order,
    # with zero columns padding Cout to a lane-dense multiple of 128.
    coutp = _round_up(cout, _LANES)
    wmat = jnp.transpose(w, (2, 3, 1, 0)).reshape(kh * kw * cin, cout)
    if coutp != cout:
        wmat = jnp.pad(wmat, ((0, 0), (0, coutp - cout)))
    wmat = wmat.astype(jnp.bfloat16)

    if use_bn:
        out = _conv_bn_lrelu_layer(patches, wmat, out_dtype)     # BN layers: bias=False
    else:
        bias = b if b is not None else jnp.zeros((cout,), jnp.float32)
        bias = jnp.pad(bias.astype(jnp.float32), (0, coutp - cout)).reshape(1, coutp)
        out = _conv_bias_layer(patches, wmat, bias, use_lrelu, out_dtype)

    out = out[:m, :cout]
    return out.reshape(n, ho, wo, cout)


def nlayer_discriminator_forward(x_nchw, params):
    x = jnp.transpose(x_nchw, (0, 2, 3, 1)).astype(jnp.bfloat16)   # NCHW -> NHWC, bf16
    for li, (w, b, stride, use_bn, use_lrelu) in enumerate(params):
        last = li == len(params) - 1
        out_dtype = jnp.float32 if last else jnp.bfloat16
        x = _conv_block(x, w, b, stride, use_bn, use_lrelu, out_dtype)
    return jnp.transpose(x, (0, 3, 1, 2)).astype(jnp.float32)      # NHWC -> NCHW


# -------------------------------------------------------------- params / reference
def init_params(key, input_nc, ndf=8, n_layers=3):
    """Deterministic synthetic weights, matching the nn.Module layer shapes."""
    keys = iter(jax.random.split(key, 16))

    def nrm(shape, s=0.05):
        return jax.random.normal(next(keys), shape, jnp.float32) * s

    layers = []
    # Conv(input_nc, ndf, k4 s2 p1) + bias, LeakyReLU(0.2)
    layers.append((nrm((ndf, input_nc, 4, 4)), nrm((ndf,), 0.01), 2, False, True))
    nf_mult = 1
    for n in range(1, n_layers):
        nf_prev, nf_mult = nf_mult, min(2 ** n, 8)
        # Conv(... s2, bias=False), BatchNorm2d, LeakyReLU(0.2)
        layers.append((nrm((ndf * nf_mult, ndf * nf_prev, 4, 4)), None, 2, True, True))
    nf_prev, nf_mult = nf_mult, min(2 ** n_layers, 8)
    # Conv(... s1, bias=False), BatchNorm2d, LeakyReLU(0.2)
    layers.append((nrm((ndf * nf_mult, ndf * nf_prev, 4, 4)), None, 1, True, True))
    # Conv(ndf*nf_mult, 1, k4 s1 p1) + bias
    layers.append((nrm((1, ndf * nf_mult, 4, 4)), nrm((1,), 0.01), 1, False, False))
    return layers


def ref_forward(x_nchw, params):
    """Pure-JAX f32 reference (lax.conv) reproducing the PyTorch forward."""
    x = x_nchw
    for (w, b, stride, use_bn, use_lrelu) in params:
        y = jax.lax.conv_general_dilated(
            x, w, (stride, stride), [(1, 1), (1, 1)],
            dimension_numbers=("NCHW", "OIHW", "NCHW"))
        if b is not None:
            y = y + b[None, :, None, None]
        if use_bn:
            mean = jnp.mean(y, axis=(0, 2, 3), keepdims=True)
            var = jnp.mean((y - mean) ** 2, axis=(0, 2, 3), keepdims=True)
            y = (y - mean) / jnp.sqrt(var + 1e-5)
        if use_lrelu:
            y = jnp.where(y >= 0, y, 0.2 * y)
        x = y
    return x


if __name__ == "__main__":
    key = jax.random.PRNGKey(0)
    kx, kp = jax.random.split(key)

    # Small but valid shapes: 3 stride-2 convs + 2 stride-1 k=4 convs need >= 32 spatial.
    input_nc, ndf, n_layers = 4, 8, 3
    x = jax.random.normal(kx, (2, input_nc, 32, 32), jnp.float32)
    params = init_params(kp, input_nc=input_nc, ndf=ndf, n_layers=n_layers)

    out = nlayer_discriminator_forward(x, params)
    out = jax.block_until_ready(out)

    ref = ref_forward(x, params)
    assert out.shape == ref.shape, (out.shape, ref.shape)
    max_err = float(jnp.max(jnp.abs(out - ref)))
    scale = 1.0 + float(jnp.max(jnp.abs(ref)))
    # bf16 inter-layer activations (matmul accumulation + BN/LeakyReLU math stay f32).
    assert max_err < 4e-2 * scale, f"mismatch: max_err={max_err}"

    print("KERNEL_OK")
</pallas_src>

<mosaic_0001>
module attributes {stable_mosaic.version = 11 : i64} {
  func.func @kernel(%arg0: i32, %arg1: memref<512x64xbf16, #tpu.memory_space<vmem>>, %arg2: memref<64x128xbf16, #tpu.memory_space<vmem>>, %arg3: memref<1x128xf32, #tpu.memory_space<vmem>>, %arg4: memref<512x128xbf16, #tpu.memory_space<vmem>>) attributes {dimension_semantics = [#tpu.dimension_semantics<parallel>], iteration_bounds = array<i64: 1>, scalar_prefetch = 0 : i64, scratch_operands = 0 : i64, tpu.core_type = #tpu.core_type<tc>, window_params = [{transform_indices = @transform_0, window_bounds = array<i64: 512, 64>}, {pipeline_mode = #tpu.pipeline_mode<synchronous>, transform_indices = @transform_1, window_bounds = array<i64: 64, 128>}, {pipeline_mode = #tpu.pipeline_mode<synchronous>, transform_indices = @transform_2, window_bounds = array<i64: 1, 128>}, {transform_indices = @transform_3, window_bounds = array<i64: 512, 128>}]} {
    %c0 = arith.constant 0 : index
    %c0_0 = arith.constant 0 : index
    %0 = vector.load %arg1[%c0, %c0_0] : memref<512x64xbf16, #tpu.memory_space<vmem>>, vector<512x64xbf16>
    %c0_1 = arith.constant 0 : index
    %c0_2 = arith.constant 0 : index
    %1 = vector.load %arg2[%c0_1, %c0_2] : memref<64x128xbf16, #tpu.memory_space<vmem>>, vector<64x128xbf16>
    %cst = arith.constant dense<0.000000e+00> : vector<512x128xf32>
    %2 = tpu.matmul %0, %1, %cst {dimension_numbers = #tpu.dot_dimension_numbers<[1], [0], [0], [1], [0, 0, 1, 1], [], []>} : vector<512x64xbf16>, vector<64x128xbf16>, vector<512x128xf32> -> vector<512x128xf32>
    %c0_3 = arith.constant 0 : index
    %c0_4 = arith.constant 0 : index
    %3 = vector.load %arg3[%c0_3, %c0_4] : memref<1x128xf32, #tpu.memory_space<vmem>>, vector<1x128xf32>
    %4 = vector.broadcast %3 : vector<1x128xf32> to vector<512x128xf32>
    %5 = arith.addf %2, %4 : vector<512x128xf32>
    %cst_5 = arith.constant 0.000000e+00 : f32
    %6 = vector.broadcast %cst_5 : f32 to vector<512x128xf32>
    %7 = arith.cmpf oge, %5, %6 : vector<512x128xf32>
    %cst_6 = arith.constant 2.000000e-01 : f32
    %8 = vector.broadcast %cst_6 : f32 to vector<512x128xf32>
    %9 = arith.mulf %8, %5 : vector<512x128xf32>
    %10 = arith.select %7, %5, %9 : vector<512x128xi1>, vector<512x128xf32>
    %11 = arith.truncf %10 : vector<512x128xf32> to vector<512x128xbf16>
    %c0_7 = arith.constant 0 : index
    %c0_8 = arith.constant 0 : index
    %12 = vector.load %arg4[%c0_7, %c0_8] : memref<512x128xbf16, #tpu.memory_space<vmem>>, vector<512x128xbf16>
    tpu.vector_store %arg4[%c0_7, %c0_8], %11 {strides = array<i32>} : memref<512x128xbf16, #tpu.memory_space<vmem>>, vector<512x128xbf16>,
    return
  }
  func.func @transform_0(%arg0: i32) -> (i32, i32) {
    %c0_i32 = arith.constant 0 : i32
    %c0_i32_0 = arith.constant 0 : i32
    return %arg0, %c0_i32 : i32, i32
  }
  func.func @transform_1(%arg0: i32) -> (i32, i32) {
    %c0_i32 = arith.constant 0 : i32
    %c0_i32_0 = arith.constant 0 : i32
    %c0_i32_1 = arith.constant 0 : i32
    return %c0_i32, %c0_i32_0 : i32, i32
  }
  func.func @transform_2(%arg0: i32) -> (i32, i32) {
    %c0_i32 = arith.constant 0 : i32
    %c0_i32_0 = arith.constant 0 : i32
    %c0_i32_1 = arith.constant 0 : i32
    return %c0_i32, %c0_i32_0 : i32, i32
  }
  func.func @transform_3(%arg0: i32) -> (i32, i32) {
    %c0_i32 = arith.constant 0 : i32
    %c0_i32_0 = arith.constant 0 : i32
    return %arg0, %c0_i32 : i32, i32
  }
}

</mosaic_0001>

<bundles_post_ra>
// kernel: tpu_custom_call.1
= control target key start
LH: loop header
LB: loop body
LE: loop exit
PB: predicated region body
PF: predicated region fallthrough
CT: control target
= control target key end

     0   :  { %vm279_vm0 = vcmask 523264   ;;  %s2014_s0 = inlined_call_operand.vmem [shape: bf16[512,64], index: 0, kind: input, shape index: {}]   ;;  %s2015_s1 = inlined_call_operand.vmem [shape: bf16[64,128], index: 1, kind: input, shape index: {}]   ;;  %s2016_s2 = inlined_call_operand.vmem [shape: f32[1,128], index: 2, kind: input, shape index: {}]   ;;  %s2017_s3 = inlined_call_operand.hbm [shape: bf16[512,128], index: 3, kind: output, shape index: {}]  }
   0x1   :  { %v1700_v0 = vld [vmem:[%s2015_s1] sm:$0xff]   ;;  %v1701_v1 = vld [vmem:[%s2015_s1 + $0x8] sm:$0xff]   ;;  %v1702_v2 = vld [vmem:[%s2015_s1 + $0x10] sm:$0xff]  }
   0x2   :  { %1617 = vmatprep.subr.bf16.mxu0 %v1700_v0  ;;  %1689 = vmatprep.subr.bf16.mxu1 %v1700_v0  ;;  %v1704_v3 = vld [vmem:[%s2014_s0] sm:$0xff]   ;;  %v1703_v5 = vld [vmem:[%s2015_s1 + $0x18] sm:$0xff]   ;;  %v1706_v6 = vld [vmem:[%s2014_s0 + $0x8] sm:$0xff]  }
   0x3   :  { %1618 = vmatpush3.bf16.msra.mxu0 %v1700_v0  ;;  %1693 = vmatpush3.bf16.msra.mxu1 %v1700_v0  ;;  %v1705_v4 = vld [vmem:[%s2014_s0 + $0x80] sm:$0xff]   ;;  %v1707_v7 = vld [vmem:[%s2014_s0 + $0x88] sm:$0xff]   ;;  %v1708_v8 = vld [vmem:[%s2014_s0 + $0x10] sm:$0xff]  }
   0x4   :  { %1619 = vmatprep.subr.bf16.mxu0 %v1701_v1  ;;  %1690 = vmatprep.subr.bf16.mxu1 %v1701_v1  ;;  %v1709_v9 = vld [vmem:[%s2014_s0 + $0x90] sm:$0xff]   ;;  %v1710_v10 = vld [vmem:[%s2014_s0 + $0x18] sm:$0xff]   ;;  %v1712_v12 = vld [vmem:[%s2014_s0 + $0x20] sm:$0xff]  }
   0x5   :  { %1625 = vmatprep.mubr.msk.bf16.mxu0 %vm279_vm0, %v1704_v3  ;;  %1657 = vmatprep.mubr.msk.bf16.mxu1 %vm279_vm0, %v1705_v4  ;;  %v1711_v11 = vld [vmem:[%s2014_s0 + $0x98] sm:$0xff]   ;;  %v1713_v13 = vld [vmem:[%s2014_s0 + $0xa0] sm:$0xff]   ;;  %v1714_v14 = vld [vmem:[%s2014_s0 + $0x28] sm:$0xff]  }
   0x6   :  { %v1715_v15 = vld [vmem:[%s2014_s0 + $0xa8] sm:$0xff]   ;;  %v1716_v16 = vld [vmem:[%s2014_s0 + $0x30] sm:$0xff]  }
   0x7   :  { %1620 = vmatpush3.bf16.msra.mxu0 %v1701_v1  ;;  %1694 = vmatpush3.bf16.msra.mxu1 %v1701_v1  ;;  %v1717_v17 = vld [vmem:[%s2014_s0 + $0xb0] sm:$0xff]  }
   0x8   :  { %1621 = vmatprep.subr.bf16.mxu0 %v1702_v2  ;;  %1691 = vmatprep.subr.bf16.mxu1 %v1702_v2 }
   0xb   :  { %1622 = vmatpush3.bf16.msra.mxu0 %v1702_v2  ;;  %1695 = vmatpush3.bf16.msra.mxu1 %v1702_v2 }
   0xc   :  { %1623 = vmatprep.subr.bf16.mxu0 %v1703_v5  ;;  %1692 = vmatprep.subr.bf16.mxu1 %v1703_v5 }
   0xf   :  { %1624 = vmatpush3.bf16.msra.mxu0 %v1703_v5  ;;  %1696 = vmatpush3.bf16.msra.mxu1 %v1703_v5 }
  0x12   :  { %1626 = vmatmul.mubr.msk.bf16.vlgmr.msra.gmra.mrb[0].mxu0 %vm279_vm0, %v1706_v6  ;;  %1658 = vmatmul.mubr.msk.bf16.vlgmr.msra.gmra.mrb[0].mxu1 %vm279_vm0, %v1707_v7 }
  0x13   :  { %1629 = vmatprep.mubr.msk.bf16.mxu0 %vm279_vm0, %v1708_v8  ;;  %1661 = vmatprep.mubr.msk.bf16.mxu1 %vm279_vm0, %v1709_v9 }
  0x1a   :  { %1630 = vmatmul.mubr.msk.bf16.gmra.mrb[4].mxu0 %vm279_vm0, %v1710_v10  ;;  %1662 = vmatmul.mubr.msk.bf16.gmra.mrb[4].mxu1 %vm279_vm0, %v1711_v11 }
  0x1b   :  { %1633 = vmatprep.mubr.msk.bf16.mxu0 %vm279_vm0, %v1712_v12  ;;  %1665 = vmatprep.mubr.msk.bf16.mxu1 %vm279_vm0, %v1713_v13 }
  0x22   :  { %1634 = vmatmul.mubr.msk.bf16.gmra.mrb[8].mxu0 %vm279_vm0, %v1714_v14  ;;  %1666 = vmatmul.mubr.msk.bf16.gmra.mrb[8].mxu1 %vm279_vm0, %v1715_v15 }
  0x23   :  { %1637 = vmatprep.mubr.msk.bf16.mxu0 %vm279_vm0, %v1716_v16  ;;  %1669 = vmatprep.mubr.msk.bf16.mxu1 %vm279_vm0, %v1717_v17 }
  0x24   :  { %8 = vsyncpa [#allocation3], 0  ;;  %v1718_v18 = vld [vmem:[%s2014_s0 + $0x38] sm:$0xff]   ;;  %v1720_v20 = vld [vmem:[%s2014_s0 + $0x40] sm:$0xff]  }
  0x25   :  { %v1719_v19 = vld [vmem:[%s2014_s0 + $0xb8] sm:$0xff]   ;;  %v1721_v21 = vld [vmem:[%s2014_s0 + $0xc0] sm:$0xff]   ;;  %v1722_v22 = vld [vmem:[%s2014_s0 + $0x48] sm:$0xff]  }
  0x26   :  { %v1723_v23 = vld [vmem:[%s2014_s0 + $0xc8] sm:$0xff]   ;;  %v1724_v24 = vld [vmem:[%s2014_s0 + $0x50] sm:$0xff]   ;;  %v1726_v26 = vld [vmem:[%s2014_s0 + $0x58] sm:$0xff]  }
  0x27   :  { %v1725_v25 = vld [vmem:[%s2014_s0 + $0xd0] sm:$0xff]   ;;  %v1727_v27 = vld [vmem:[%s2014_s0 + $0xd8] sm:$0xff]   ;;  %v1728_v28 = vld [vmem:[%s2014_s0 + $0x60] sm:$0xff]  }
  0x28   :  { %v1729_v29 = vld [vmem:[%s2014_s0 + $0xe0] sm:$0xff]   ;;  %v1730_v30 = vld [vmem:[%s2014_s0 + $0x68] sm:$0xff]   ;;  %v1732_v32 = vld [vmem:[%s2014_s0 + $0x70] sm:$0xff]  }
  0x29   :  { %v1731_v31 = vld [vmem:[%s2014_s0 + $0xe8] sm:$0xff]   ;;  %v1733_v33 = vld [vmem:[%s2014_s0 + $0xf0] sm:$0xff]   ;;  %v1734_v34 = vld [vmem:[%s2014_s0 + $0x78] sm:$0xff]  }
  0x2a   :  { %1638 = vmatmul.mubr.msk.bf16.gmra.mrb[12].mxu0 %vm279_vm0, %v1718_v18  ;;  %1670 = vmatmul.mubr.msk.bf16.gmra.mrb[12].mxu1 %vm279_vm0, %v1719_v19  ;;  %v1735_v35 = vld [vmem:[%s2014_s0 + $0xf8] sm:$0xff]   ;;  %v1926_v36 = vld [vmem:[%s2016_s2] ss:$0 sm:$0xff]  ;;  %s1760_s0 = smov [#allocation2]  }
  0x2b   :  { %1641 = vmatprep.mubr.msk.bf16.mxu0 %vm279_vm0, %v1720_v20  ;;  %1673 = vmatprep.mubr.msk.bf16.mxu1 %vm279_vm0, %v1721_v21  ;;  %s1182_s2 = sshll.u32 %s1760_s0, 4  ;;  %s1183_s2 = int_to_ptr.vmem [resolvable:$true] %s1182_s2 }
  0x2c   :  { %s1736_s1 = scalar_lea.vmem %s1183_s2, 4096  ;;  %p1741_p1 = scmp.lt.s32.totalorder %s1183_s2, %s1183_s2 }
  0x2d   :  { %p1737_p0 = scmp.ne.s32.totalorder %s1183_s2, %s1736_s1  ;;  %p1742_p2 = scmp.lt.s32.totalorder %s1736_s1, %s1736_s1 }
  0x2f   :  { %p1743_p3 = por %p1742_p2, %p1741_p1 }
  0x31   :  { %p1744_p4 = pnand %p1743_p3, %p1737_p0 }
  0x32   :  { %1642 = vmatmul.mubr.msk.bf16.gmra.mrb[16].mxu0 %vm279_vm0, %v1722_v22  ;;  %1674 = vmatmul.mubr.msk.bf16.gmra.mrb[16].mxu1 %vm279_vm0, %v1723_v23 }
  0x33   :  { %1645 = vmatprep.mubr.msk.bf16.mxu0 %vm279_vm0, %v1724_v24  ;;  %1677 = vmatprep.mubr.msk.bf16.mxu1 %vm279_vm0, %v1725_v25 }
  0x3a   :  { %1646 = vmatmul.mubr.msk.bf16.gmra.mrb[20].mxu0 %vm279_vm0, %v1726_v26  ;;  %1678 = vmatmul.mubr.msk.bf16.gmra.mrb[20].mxu1 %vm279_vm0, %v1727_v27 }
  0x3b   :  { %1649 = vmatprep.mubr.msk.bf16.mxu0 %vm279_vm0, %v1728_v28  ;;  %1681 = vmatprep.mubr.msk.bf16.mxu1 %vm279_vm0, %v1729_v29 }
  0x42   :  { %1650 = vmatmul.mubr.msk.bf16.gmra.mrb[24].mxu0 %vm279_vm0, %v1730_v30  ;;  %1682 = vmatmul.mubr.msk.bf16.gmra.mrb[24].mxu1 %vm279_vm0, %v1731_v31 }
  0x43   :  { %1653 = vmatprep.mubr.msk.bf16.mxu0 %vm279_vm0, %v1732_v32  ;;  %1685 = vmatprep.mubr.msk.bf16.mxu1 %vm279_vm0, %v1733_v33 }
  0x4a   :  { %1654 = vmatmul.mubr.msk.bf16.gmra.mrb[28].mxu0 %vm279_vm0, %v1734_v34  ;;  %1686 = vmatmul.mubr.msk.bf16.gmra.mrb[28].mxu1 %vm279_vm0, %v1735_v35 }
  0xe5   :  { %v1627_v37 = vpop.f32.mrb[0].mxu0  ;;  %v1659_v38 = vpop.f32.mrb[0].mxu1 }
  0xe6   :  { %v419_v39 = vadd.f32 %v1627_v37, %v1926_v36  ;;  %v547_v40 = vadd.f32 %v1659_v38, %v1926_v36  ;;  %v410_v41 = vpop.f32.mrb[1].mxu0  ;;  %v538_v42 = vpop.f32.mrb[1].mxu1 }
  0xe7   :  { %v411_v43 = vadd.f32 %v1926_v36, %v410_v41  ;;  %v539_v44 = vadd.f32 %v1926_v36, %v538_v42  ;;  %v1628_v45 = vpop.f32.mrb[2].mxu0  ;;  %v1660_v46 = vpop.f32.mrb[2].mxu1 }
  0xe8   :  { %vm667_vm1 = vcmp.ge.f32.partialorder %v419_v39, 0.0  ;;  %v731_v47 = vmul.f32 0.2, %v419_v39  ;;  %vm699_vm2 = vcmp.ge.f32.partialorder %v547_v40, 0.0  ;;  %v763_v48 = vmul.f32 0.2, %v547_v40 }
  0xe9   :  { %vm665_vm3 = vcmp.ge.f32.partialorder %v411_v43, 0.0  ;;  %v729_v49 = vmul.f32 0.2, %v411_v43  ;;  %vm697_vm4 = vcmp.ge.f32.partialorder %v539_v44, 0.0  ;;  %v761_v50 = vmul.f32 0.2, %v539_v44 }
  0xea   :  { %v422_v51 = vadd.f32 %v1628_v45, %v1926_v36  ;;  %v550_v52 = vadd.f32 %v1660_v46, %v1926_v36  ;;  %v413_v53 = vpop.f32.mrb[3].mxu0  ;;  %v541_v54 = vpop.f32.mrb[3].mxu1  ;;  %v795_v55 = vsel %vm667_vm1, %v419_v39, %v731_v47  ;;  %v827_v56 = vsel %vm699_vm2, %v547_v40, %v763_v48 }
  0xeb   :  { %v414_v57 = vadd.f32 %v1926_v36, %v413_v53  ;;  %v542_v58 = vadd.f32 %v1926_v36, %v541_v54  ;;  %v793_v63 = vsel %vm665_vm3, %v411_v43, %v729_v49  ;;  %v825_v0 = vsel %vm697_vm4, %v539_v44, %v761_v50 }
  0xec   :  { %vm668_vm5 = vcmp.ge.f32.partialorder %v422_v51, 0.0  ;;  %v732_v59 = vmul.f32 0.2, %v422_v51  ;;  %vm700_vm6 = vcmp.ge.f32.partialorder %v550_v52, 0.0  ;;  %v764_v60 = vmul.f32 0.2, %v550_v52 }
  0xed   :  { %vm666_vm7 = vcmp.ge.f32.partialorder %v414_v57, 0.0  ;;  %v730_v61 = vmul.f32 0.2, %v414_v57  ;;  %vm698_vm8 = vcmp.ge.f32.partialorder %v542_v58, 0.0  ;;  %v762_v62 = vmul.f32 0.2, %v542_v58 }
  0xee   :  { %v796_v1 = vsel %vm668_vm5, %v422_v51, %v732_v59  ;;  %v828_v2 = vsel %vm700_vm6, %v550_v52, %v764_v60  ;;  %v1631_v3 = vpop.f32.mrb[4].mxu0  ;;  %v1663_v4 = vpop.f32.mrb[4].mxu1 }
  0xef   :  { %v1398_v5 = vpack.c.bf16 %v796_v1, %v795_v55  ;;  %v1478_v6 = vpack.c.bf16 %v828_v2, %v827_v56  ;;  %v794_v7 = vsel %vm666_vm7, %v414_v57, %v730_v61  ;;  %v826_v8 = vsel %vm698_vm8, %v542_v58, %v762_v62  ;;  %v426_v9 = vpop.f32.mrb[5].mxu0  ;;  %v554_v10 = vpop.f32.mrb[5].mxu1 }
  0xf0   :  { %v1393_v11 = vpack.c.bf16 %v794_v7, %v793_v63  ;;  %v1473_v12 = vpack.c.bf16 %v826_v8, %v825_v0  ;;  %v435_v13 = vadd.f32 %v1631_v3, %v1926_v36  ;;  %v563_v14 = vadd.f32 %v1663_v4, %v1926_v36  ;;  %v1632_v15 = vpop.f32.mrb[6].mxu0  ;;  %v1664_v16 = vpop.f32.mrb[6].mxu1 }
  0xf1   :  { %1550 = vst [vmem:[#allocation2 + $0x8] sm:$0xff] %v1398_v5   ;;  %1566 = vst [vmem:[#allocation2 + $0x88] sm:$0xff] %v1478_v6   ;;  %v427_v17 = vadd.f32 %v1926_v36, %v426_v9  ;;  %v555_v18 = vadd.f32 %v1926_v36, %v554_v10  ;;  %v438_v19 = vadd.f32 %v1632_v15, %v1926_v36  ;;  %v429_v21 = vpop.f32.mrb[7].mxu0  ;;  %v557_v22 = vpop.f32.mrb[7].mxu1 }
  0xf2   :  { %v566_v20 = vadd.f32 %v1664_v16, %v1926_v36  ;;  %1394 = vst [vmem:[#allocation2] sm:$0xff] %v1393_v11   ;;  %1565 = vst [vmem:[#allocation2 + $0x80] sm:$0xff] %v1473_v12   ;;  %vm671_vm9 = vcmp.ge.f32.partialorder %v435_v13, 0.0  ;;  %v735_v23 = vmul.f32 0.2, %v435_v13  ;;  %vm703_vm10 = vcmp.ge.f32.partialorder %v563_v14, 0.0 }
  0xf3   :  { %v767_v24 = vmul.f32 0.2, %v563_v14  ;;  %vm669_vm11 = vcmp.ge.f32.partialorder %v427_v17, 0.0  ;;  %v733_v25 = vmul.f32 0.2, %v427_v17  ;;  %vm701_vm12 = vcmp.ge.f32.partialorder %v555_v18, 0.0 }
  0xf4   :  { %v765_v26 = vmul.f32 0.2, %v555_v18  ;;  %v799_v27 = vsel %vm671_vm9, %v435_v13, %v735_v23  ;;  %vm672_vm13 = vcmp.ge.f32.partialorder %v438_v19, 0.0  ;;  %v736_v29 = vmul.f32 0.2, %v438_v19 }
  0xf5   :  { %v831_v28 = vsel %vm703_vm10, %v563_v14, %v767_v24  ;;  %v797_v30 = vsel %vm669_vm11, %v427_v17, %v733_v25  ;;  %vm704_vm14 = vcmp.ge.f32.partialorder %v566_v20, 0.0  ;;  %v768_v32 = vmul.f32 0.2, %v566_v20  ;;  %v1635_v33 = vpop.f32.mrb[8].mxu0  ;;  %v1667_v34 = vpop.f32.mrb[8].mxu1 }
  0xf6   :  { %v829_v31 = vsel %vm701_vm12, %v555_v18, %v765_v26  ;;  %v800_v35 = vsel %vm672_vm13, %v438_v19, %v736_v29  ;;  %v430_v37 = vadd.f32 %v1926_v36, %v429_v21  ;;  %v558_v38 = vadd.f32 %v1926_v36, %v557_v22  ;;  %v442_v40 = vpop.f32.mrb[9].mxu0  ;;  %v570_v41 = vpop.f32.mrb[9].mxu1 }
  0xf7   :  { %v451_v39 = vadd.f32 %v1635_v33, %v1926_v36  ;;  %v1408_v42 = vpack.c.bf16 %v800_v35, %v799_v27  ;;  %v832_v43 = vsel %vm704_vm14, %v566_v20, %v768_v32  ;;  %v579_v44 = vadd.f32 %v1667_v34, %v1926_v36  ;;  %v1636_v46 = vpop.f32.mrb[10].mxu0  ;;  %v1668_v47 = vpop.f32.mrb[10].mxu1 }
  0xf8   :  { %v443_v45 = vadd.f32 %v1926_v36, %v442_v40  ;;  %v1488_v48 = vpack.c.bf16 %v832_v43, %v831_v28  ;;  %vm670_vm15 = vcmp.ge.f32.partialorder %v430_v37, 0.0  ;;  %v734_v49 = vmul.f32 0.2, %v430_v37  ;;  %v445_v50 = vpop.f32.mrb[11].mxu0  ;;  %v573_v51 = vpop.f32.mrb[11].mxu1 }
  0xf9   :  { %vm702_vm0 = vcmp.ge.f32.partialorder %v558_v38, 0.0  ;;  %1552 = vst [vmem:[#allocation2 + $0x18] sm:$0xff] %v1408_v42   ;;  %v766_v52 = vmul.f32 0.2, %v558_v38  ;;  %vm675_vm1 = vcmp.ge.f32.partialorder %v451_v39, 0.0  ;;  %vm707_vm2 = vcmp.ge.f32.partialorder %v579_v44, 0.0 }
  0xfa   :  { %v739_v53 = vmul.f32 0.2, %v451_v39  ;;  %1568 = vst [vmem:[#allocation2 + $0x98] sm:$0xff] %v1488_v48   ;;  %v798_v54 = vsel %vm670_vm15, %v430_v37, %v734_v49  ;;  %v771_v55 = vmul.f32 0.2, %v579_v44  ;;  %vm673_vm3 = vcmp.ge.f32.partialorder %v443_v45, 0.0 }
  0xfb   :  { %v737_v56 = vmul.f32 0.2, %v443_v45  ;;  %v1403_v57 = vpack.c.bf16 %v798_v54, %v797_v30  ;;  %v830_v58 = vsel %vm702_vm0, %v558_v38, %v766_v52  ;;  %v571_v60 = vadd.f32 %v1926_v36, %v570_v41 }
  0xfc   :  { %v803_v59 = vsel %vm675_vm1, %v451_v39, %v739_v53  ;;  %v1483_v61 = vpack.c.bf16 %v830_v58, %v829_v31  ;;  %v835_v62 = vsel %vm707_vm2, %v579_v44, %v771_v55  ;;  %v454_v0 = vadd.f32 %v1636_v46, %v1926_v36 }
  0xfd   :  { %v801_v63 = vsel %vm673_vm3, %v443_v45, %v737_v56  ;;  %1551 = vst [vmem:[#allocation2 + $0x10] sm:$0xff] %v1403_v57   ;;  %vm705_vm4 = vcmp.ge.f32.partialorder %v571_v60, 0.0  ;;  %v769_v1 = vmul.f32 0.2, %v571_v60  ;;  %v582_v2 = vadd.f32 %v1668_v47, %v1926_v36  ;;  %v1639_v4 = vpop.f32.mrb[12].mxu0  ;;  %v1671_v5 = vpop.f32.mrb[12].mxu1 }
  0xfe   :  { %v446_v3 = vadd.f32 %v1926_v36, %v445_v50  ;;  %1567 = vst [vmem:[#allocation2 + $0x90] sm:$0xff] %v1483_v61   ;;  %vm676_vm5 = vcmp.ge.f32.partialorder %v454_v0, 0.0  ;;  %v740_v6 = vmul.f32 0.2, %v454_v0  ;;  %v574_v7 = vadd.f32 %v1926_v36, %v573_v51  ;;  %v458_v9 = vpop.f32.mrb[13].mxu0  ;;  %v586_v10 = vpop.f32.mrb[13].mxu1 }
  0xff   :  { %v467_v8 = vadd.f32 %v1639_v4, %v1926_v36  ;;  %v833_v11 = vsel %vm705_vm4, %v571_v60, %v769_v1  ;;  %vm708_vm6 = vcmp.ge.f32.partialorder %v582_v2, 0.0  ;;  %v772_v12 = vmul.f32 0.2, %v582_v2  ;;  %v1640_v13 = vpop.f32.mrb[14].mxu0  ;;  %v1672_v14 = vpop.f32.mrb[14].mxu1 }
 0x100   :  { %vm674_vm7 = vcmp.ge.f32.partialorder %v446_v3, 0.0  ;;  %v804_v15 = vsel %vm676_vm5, %v454_v0, %v740_v6  ;;  %v738_v16 = vmul.f32 0.2, %v446_v3  ;;  %vm706_vm8 = vcmp.ge.f32.partialorder %v574_v7, 0.0  ;;  %v461_v18 = vpop.f32.mrb[15].mxu0  ;;  %v589_v22 = vpop.f32.mrb[15].mxu1 }
 0x101   :  { %v770_v17 = vmul.f32 0.2, %v574_v7  ;;  %v1418_v19 = vpack.c.bf16 %v804_v15, %v803_v59  ;;  %v836_v20 = vsel %vm708_vm6, %v582_v2, %v772_v12  ;;  %vm679_vm9 = vcmp.ge.f32.partialorder %v467_v8, 0.0 }
 0x102   :  { %v743_v21 = vmul.f32 0.2, %v467_v8  ;;  %v1498_v23 = vpack.c.bf16 %v836_v20, %v835_v62  ;;  %v802_v24 = vsel %vm674_vm7, %v446_v3, %v738_v16  ;;  %v595_v26 = vadd.f32 %v1671_v5, %v1926_v36 }
 0x103   :  { %v834_v25 = vsel %vm706_vm8, %v574_v7, %v770_v17  ;;  %1554 = vst [vmem:[#allocation2 + $0x28] sm:$0xff] %v1418_v19   ;;  %v1413_v27 = vpack.c.bf16 %v802_v24, %v801_v63  ;;  %v459_v30 = vadd.f32 %v1926_v36, %v458_v9  ;;  %v587_v32 = vadd.f32 %v1926_v36, %v586_v10 }
 0x104   :  { %v1493_v28 = vpack.c.bf16 %v834_v25, %v833_v11  ;;  %v807_v29 = vsel %vm679_vm9, %v467_v8, %v743_v21  ;;  %1570 = vst [vmem:[#allocation2 + $0xa8] sm:$0xff] %v1498_v23   ;;  %vm711_vm10 = vcmp.ge.f32.partialorder %v595_v26, 0.0  ;;  %v775_v31 = vmul.f32 0.2, %v595_v26 }
 0x105   :  { %v470_v33 = vadd.f32 %v1640_v13, %v1926_v36  ;;  %1553 = vst [vmem:[#allocation2 + $0x20] sm:$0xff] %v1413_v27   ;;  %vm677_vm11 = vcmp.ge.f32.partialorder %v459_v30, 0.0  ;;  %v741_v34 = vmul.f32 0.2, %v459_v30  ;;  %v598_v35 = vadd.f32 %v1672_v14, %v1926_v36  ;;  %v1643_v38 = vpop.f32.mrb[16].mxu0  ;;  %v1675_v39 = vpop.f32.mrb[16].mxu1 }
 0x106   :  { %1569 = vst [vmem:[#allocation2 + $0xa0] sm:$0xff] %v1493_v28   ;;  %v462_v37 = vadd.f32 %v1926_v36, %v461_v18  ;;  %v839_v40 = vsel %vm711_vm10, %v595_v26, %v775_v31  ;;  %vm709_vm12 = vcmp.ge.f32.partialorder %v587_v32, 0.0  ;;  %v773_v41 = vmul.f32 0.2, %v587_v32  ;;  %v474_v42 = vpop.f32.mrb[17].mxu0  ;;  %v602_v43 = vpop.f32.mrb[17].mxu1 }
 0x107   :  { %vm680_vm13 = vcmp.ge.f32.partialorder %v470_v33, 0.0  ;;  %v805_v44 = vsel %vm677_vm11, %v459_v30, %v741_v34  ;;  %v744_v45 = vmul.f32 0.2, %v470_v33  ;;  %vm712_vm14 = vcmp.ge.f32.partialorder %v598_v35, 0.0  ;;  %v1644_v47 = vpop.f32.mrb[18].mxu0  ;;  %v1676_v51 = vpop.f32.mrb[18].mxu1 }
 0x108   :  { %v776_v46 = vmul.f32 0.2, %v598_v35  ;;  %v837_v48 = vsel %vm709_vm12, %v587_v32, %v773_v41  ;;  %vm678_vm15 = vcmp.ge.f32.partialorder %v462_v37, 0.0  ;;  %v742_v49 = vmul.f32 0.2, %v462_v37  ;;  %v477_v52 = vpop.f32.mrb[19].mxu0 }
 0x109   :  { %v590_v50 = vadd.f32 %v1926_v36, %v589_v22  ;;  %v808_v53 = vsel %vm680_vm13, %v470_v33, %v744_v45  ;;  %v483_v55 = vadd.f32 %v1643_v38, %v1926_v36  ;;  %v611_v56 = vadd.f32 %v1675_v39, %v1926_v36  ;;  %v605_v57 = vpop.f32.mrb[19].mxu1 }
 0x10a   :  { %v840_v54 = vsel %vm712_vm14, %v598_v35, %v776_v46  ;;  %v1428_v58 = vpack.c.bf16 %v808_v53, %v807_v29  ;;  %v806_v60 = vsel %vm678_vm15, %v462_v37, %v742_v49  ;;  %v475_v1 = vadd.f32 %v1926_v36, %v474_v42 }
 0x10b   :  { %v1508_v59 = vpack.c.bf16 %v840_v54, %v839_v40  ;;  %vm710_vm0 = vcmp.ge.f32.partialorder %v590_v50, 0.0  ;;  %v1423_v61 = vpack.c.bf16 %v806_v60, %v805_v44  ;;  %v774_v62 = vmul.f32 0.2, %v590_v50 }
 0x10c   :  { %vm683_vm1 = vcmp.ge.f32.partialorder %v483_v55, 0.0  ;;  %v747_v63 = vmul.f32 0.2, %v483_v55  ;;  %1556 = vst [vmem:[#allocation2 + $0x38] sm:$0xff] %v1428_v58   ;;  %vm715_vm2 = vcmp.ge.f32.partialorder %v611_v56, 0.0  ;;  %v603_v2 = vadd.f32 %v1926_v36, %v602_v43 }
 0x10d   :  { %1572 = vst [vmem:[#allocation2 + $0xb8] sm:$0xff] %v1508_v59   ;;  %v779_v0 = vmul.f32 0.2, %v611_v56  ;;  %1555 = vst [vmem:[#allocation2 + $0x30] sm:$0xff] %v1423_v61   ;;  %v838_v3 = vsel %vm710_vm0, %v590_v50, %v774_v62  ;;  %v486_v5 = vadd.f32 %v1644_v47, %v1926_v36  ;;  %v614_v6 = vadd.f32 %v1676_v51, %v1926_v36  ;;  %v1647_v7 = vpop.f32.mrb[20].mxu0  ;;  %v1679_v8 = vpop.f32.mrb[20].mxu1 }
 0x10e   :  { %v811_v4 = vsel %vm683_vm1, %v483_v55, %v747_v63  ;;  %v1503_v9 = vpack.c.bf16 %v838_v3, %v837_v48  ;;  %vm681_vm3 = vcmp.ge.f32.partialorder %v475_v1, 0.0  ;;  %v745_v11 = vmul.f32 0.2, %v475_v1  ;;  %v490_v12 = vpop.f32.mrb[21].mxu0  ;;  %v618_v13 = vpop.f32.mrb[21].mxu1 }
 0x10f   :  { %v843_v10 = vsel %vm715_vm2, %v611_v56, %v779_v0  ;;  %vm713_vm4 = vcmp.ge.f32.partialorder %v603_v2, 0.0  ;;  %v777_v14 = vmul.f32 0.2, %v603_v2  ;;  %vm684_vm5 = vcmp.ge.f32.partialorder %v486_v5, 0.0  ;;  %v1648_v19 = vpop.f32.mrb[22].mxu0  ;;  %v1680_v20 = vpop.f32.mrb[22].mxu1 }
 0x110   :  { %v748_v15 = vmul.f32 0.2, %v486_v5  ;;  %1571 = vst [vmem:[#allocation2 + $0xb0] sm:$0xff] %v1503_v9   ;;  %v809_v16 = vsel %vm681_vm3, %v475_v1, %v745_v11  ;;  %vm716_vm6 = vcmp.ge.f32.partialorder %v614_v6, 0.0  ;;  %v780_v17 = vmul.f32 0.2, %v614_v6 }
 0x111   :  { %v478_v18 = vadd.f32 %v1926_v36, %v477_v52  ;;  %v841_v21 = vsel %vm713_vm4, %v603_v2, %v777_v14  ;;  %v606_v23 = vadd.f32 %v1926_v36, %v605_v57  ;;  %v499_v24 = vadd.f32 %v1647_v7, %v1926_v36  ;;  %v493_v25 = vpop.f32.mrb[23].mxu0  ;;  %v621_v26 = vpop.f32.mrb[23].mxu1 }
 0x112   :  { %v812_v22 = vsel %vm684_vm5, %v486_v5, %v748_v15  ;;  %v844_v28 = vsel %vm716_vm6, %v614_v6, %v780_v17  ;;  %v627_v34 = vadd.f32 %v1679_v8, %v1926_v36  ;;  %v491_v35 = vadd.f32 %v1926_v36, %v490_v12 }
 0x113   :  { %v1438_v27 = vpack.c.bf16 %v812_v22, %v811_v4  ;;  %vm682_vm7 = vcmp.ge.f32.partialorder %v478_v18, 0.0  ;;  %v746_v29 = vmul.f32 0.2, %v478_v18  ;;  %v1518_v30 = vpack.c.bf16 %v844_v28, %v843_v10 }
 0x114   :  { %vm714_vm8 = vcmp.ge.f32.partialorder %v606_v23, 0.0  ;;  %v778_v31 = vmul.f32 0.2, %v606_v23  ;;  %vm687_vm9 = vcmp.ge.f32.partialorder %v499_v24, 0.0  ;;  %v751_v33 = vmul.f32 0.2, %v499_v24 }
 0x115   :  { %1558 = vst [vmem:[#allocation2 + $0x48] sm:$0xff] %v1438_v27   ;;  %v810_v32 = vsel %vm682_vm7, %v478_v18, %v746_v29  ;;  %1574 = vst [vmem:[#allocation2 + $0xc8] sm:$0xff] %v1518_v30   ;;  %v619_v39 = vadd.f32 %v1926_v36, %v618_v13  ;;  %v502_v40 = vadd.f32 %v1648_v19, %v1926_v36  ;;  %v1651_v41 = vpop.f32.mrb[24].mxu0  ;;  %v1683_v42 = vpop.f32.mrb[24].mxu1  ;;  %vm719_vm10 = vcmp.ge.f32.partialorder %v627_v34, 0.0 }
 0x116   :  { %v1433_v37 = vpack.c.bf16 %v810_v32, %v809_v16  ;;  %v842_v38 = vsel %vm714_vm8, %v606_v23, %v778_v31  ;;  %v783_v44 = vmul.f32 0.2, %v627_v34  ;;  %v506_v45 = vpop.f32.mrb[25].mxu0  ;;  %v634_v46 = vpop.f32.mrb[25].mxu1  ;;  %v815_v47 = vsel %vm687_vm9, %v499_v24, %v751_v33 }
 0x117   :  { %v1513_v43 = vpack.c.bf16 %v842_v38, %v841_v21  ;;  %vm685_vm11 = vcmp.ge.f32.partialorder %v491_v35, 0.0  ;;  %v749_v48 = vmul.f32 0.2, %v491_v35  ;;  %v781_v49 = vmul.f32 0.2, %v619_v39  ;;  %v1652_v52 = vpop.f32.mrb[26].mxu0 }
 0x118   :  { %1557 = vst [vmem:[#allocation2 + $0x40] sm:$0xff] %v1433_v37   ;;  %vm717_vm12 = vcmp.ge.f32.partialorder %v619_v39, 0.0  ;;  %vm688_vm13 = vcmp.ge.f32.partialorder %v502_v40, 0.0  ;;  %v752_v50 = vmul.f32 0.2, %v502_v40  ;;  %v630_v51 = vadd.f32 %v1680_v20, %v1926_v36  ;;  %v1684_v53 = vpop.f32.mrb[26].mxu1 }
 0x119   :  { %1573 = vst [vmem:[#allocation2 + $0xc0] sm:$0xff] %v1513_v43   ;;  %v847_v54 = vsel %vm719_vm10, %v627_v34, %v783_v44  ;;  %v813_v55 = vsel %vm685_vm11, %v491_v35, %v749_v48  ;;  %v494_v56 = vadd.f32 %v1926_v36, %v493_v25  ;;  %v622_v57 = vadd.f32 %v1926_v36, %v621_v26  ;;  %v509_v58 = vpop.f32.mrb[27].mxu0  ;;  %v637_v59 = vpop.f32.mrb[27].mxu1 }
 0x11a   :  { %v816_v60 = vsel %vm688_vm13, %v502_v40, %v752_v50  ;;  %vm720_vm14 = vcmp.ge.f32.partialorder %v630_v51, 0.0  ;;  %v784_v61 = vmul.f32 0.2, %v630_v51  ;;  %v515_v62 = vadd.f32 %v1651_v41, %v1926_v36 }
 0x11b   :  { %v1448_v63 = vpack.c.bf16 %v816_v60, %v815_v47  ;;  %vm686_vm15 = vcmp.ge.f32.partialorder %v494_v56, 0.0  ;;  %v750_v0 = vmul.f32 0.2, %v494_v56  ;;  %vm718_vm0 = vcmp.ge.f32.partialorder %v622_v57, 0.0 }
 0x11c   :  { %v848_v1 = vsel %vm720_vm14, %v630_v51, %v784_v61  ;;  %v782_v2 = vmul.f32 0.2, %v622_v57  ;;  %vm691_vm1 = vcmp.ge.f32.partialorder %v515_v62, 0.0  ;;  %v755_v3 = vmul.f32 0.2, %v515_v62 }
 0x11d   :  { %1560 = vst [vmem:[#allocation2 + $0x58] sm:$0xff] %v1448_v63   ;;  %v1528_v4 = vpack.c.bf16 %v848_v1, %v847_v54  ;;  %v814_v5 = vsel %vm686_vm15, %v494_v56, %v750_v0  ;;  %v643_v6 = vadd.f32 %v1683_v42, %v1926_v36  ;;  %v507_v7 = vadd.f32 %v1926_v36, %v506_v45  ;;  %v1655_v8 = vpop.f32.mrb[28].mxu0  ;;  %v1687_v9 = vpop.f32.mrb[28].mxu1 }
 0x11e   :  { %v845_v10 = vsel %vm717_vm12, %v619_v39, %v781_v49  ;;  %v1443_v11 = vpack.c.bf16 %v814_v5, %v813_v55  ;;  %v846_v12 = vsel %vm718_vm0, %v622_v57, %v782_v2  ;;  %v635_v13 = vadd.f32 %v1926_v36, %v634_v46  ;;  %v522_v14 = vpop.f32.mrb[29].mxu0  ;;  %v650_v15 = vpop.f32.mrb[29].mxu1 }
 0x11f   :  { %1576 = vst [vmem:[#allocation2 + $0xd8] sm:$0xff] %v1528_v4   ;;  %v1523_v16 = vpack.c.bf16 %v846_v12, %v845_v10  ;;  %vm723_vm2 = vcmp.ge.f32.partialorder %v643_v6, 0.0  ;;  %v787_v17 = vmul.f32 0.2, %v643_v6  ;;  %vm689_vm3 = vcmp.ge.f32.partialorder %v507_v7, 0.0  ;;  %v1656_v18 = vpop.f32.mrb[30].mxu0 }
 0x120   :  { %v1688_v19 = vpop.f32.mrb[30].mxu1  ;;  %1559 = vst [vmem:[#allocation2 + $0x50] sm:$0xff] %v1443_v11   ;;  %v819_v20 = vsel %vm691_vm1, %v515_v62, %v755_v3  ;;  %v753_v21 = vmul.f32 0.2, %v507_v7  ;;  %vm721_vm4 = vcmp.ge.f32.partialorder %v635_v13, 0.0  ;;  %v518_v22 = vadd.f32 %v1652_v52, %v1926_v36  ;;  %v525_v23 = vpop.f32.mrb[31].mxu0 }
 0x121   :  { %1575 = vst [vmem:[#allocation2 + $0xd0] sm:$0xff] %v1523_v16   ;;  %v785_v24 = vmul.f32 0.2, %v635_v13  ;;  %v646_v25 = vadd.f32 %v1684_v53, %v1926_v36  ;;  %v510_v26 = vadd.f32 %v1926_v36, %v509_v58  ;;  %v638_v27 = vadd.f32 %v1926_v36, %v637_v59  ;;  %v653_v28 = vpop.f32.mrb[31].mxu1 }
 0x122   :  { %v851_v29 = vsel %vm723_vm2, %v643_v6, %v787_v17  ;;  %v817_v30 = vsel %vm689_vm3, %v507_v7, %v753_v21  ;;  %vm692_vm5 = vcmp.ge.f32.partialorder %v518_v22, 0.0  ;;  %v756_v31 = vmul.f32 0.2, %v518_v22 }
 0x123   :  { %vm724_vm6 = vcmp.ge.f32.partialorder %v646_v25, 0.0  ;;  %v788_v32 = vmul.f32 0.2, %v646_v25  ;;  %vm690_vm7 = vcmp.ge.f32.partialorder %v510_v26, 0.0  ;;  %v754_v33 = vmul.f32 0.2, %v510_v26 }
 0x124   :  { %v820_v34 = vsel %vm692_vm5, %v518_v22, %v756_v31  ;;  %vm722_vm8 = vcmp.ge.f32.partialorder %v638_v27, 0.0  ;;  %v786_v35 = vmul.f32 0.2, %v638_v27  ;;  %v531_v37 = vadd.f32 %v1655_v8, %v1926_v36 }
 0x125   :  { %v1458_v38 = vpack.c.bf16 %v820_v34, %v819_v20  ;;  %v852_v39 = vsel %vm724_vm6, %v646_v25, %v788_v32  ;;  %v818_v40 = vsel %vm690_vm7, %v510_v26, %v754_v33  ;;  %v659_v41 = vadd.f32 %v1687_v9, %v1926_v36 }
 0x126   :  { %v849_v42 = vsel %vm721_vm4, %v635_v13, %v785_v24  ;;  %v1538_v43 = vpack.c.bf16 %v852_v39, %v851_v29  ;;  %v1453_v44 = vpack.c.bf16 %v818_v40, %v817_v30  ;;  %v850_v45 = vsel %vm722_vm8, %v638_v27, %v786_v35 }
 0x127   :  { %1562 = vst [vmem:[#allocation2 + $0x68] sm:$0xff] %v1458_v38   ;;  %v1533_v46 = vpack.c.bf16 %v850_v45, %v849_v42  ;;  %vm695_vm9 = vcmp.ge.f32.partialorder %v531_v37, 0.0  ;;  %v759_v47 = vmul.f32 0.2, %v531_v37  ;;  %v791_v48 = vmul.f32 0.2, %v659_v41 }
 0x128   :  { %1578 = vst [vmem:[#allocation2 + $0xe8] sm:$0xff] %v1538_v43   ;;  %1561 = vst [vmem:[#allocation2 + $0x60] sm:$0xff] %v1453_v44   ;;  %v523_v49 = vadd.f32 %v1926_v36, %v522_v14  ;;  %v651_v50 = vadd.f32 %v1926_v36, %v650_v15  ;;  %v534_v51 = vadd.f32 %v1656_v18, %v1926_v36  ;;  %vm727_vm10 = vcmp.ge.f32.partialorder %v659_v41, 0.0 }
 0x129   :  { %v662_v52 = vadd.f32 %v1688_v19, %v1926_v36  ;;  %1577 = vst [vmem:[#allocation2 + $0xe0] sm:$0xff] %v1533_v46   ;;  %v526_v53 = vadd.f32 %v1926_v36, %v525_v23  ;;  %v654_v54 = vadd.f32 %v1926_v36, %v653_v28  ;;  %v823_v55 = vsel %vm695_vm9, %v531_v37, %v759_v47 }
 0x12a   :  { %vm693_vm11 = vcmp.ge.f32.partialorder %v523_v49, 0.0  ;;  %v757_v56 = vmul.f32 0.2, %v523_v49  ;;  %v789_v57 = vmul.f32 0.2, %v651_v50  ;;  %vm696_vm12 = vcmp.ge.f32.partialorder %v534_v51, 0.0 }
 0x12b   :  { %v760_v58 = vmul.f32 0.2, %v534_v51  ;;  %vm728_vm13 = vcmp.ge.f32.partialorder %v662_v52, 0.0  ;;  %v792_v59 = vmul.f32 0.2, %v662_v52  ;;  %v855_v60 = vsel %vm727_vm10, %v659_v41, %v791_v48 }
 0x12c   :  { %vm725_vm14 = vcmp.ge.f32.partialorder %v651_v50, 0.0  ;;  %vm694_vm15 = vcmp.ge.f32.partialorder %v526_v53, 0.0  ;;  %v758_v61 = vmul.f32 0.2, %v526_v53  ;;  %vm726_vm0 = vcmp.ge.f32.partialorder %v654_v54, 0.0 }
 0x12d   :  { %v824_v62 = vsel %vm696_vm12, %v534_v51, %v760_v58  ;;  %v856_v63 = vsel %vm728_vm13, %v662_v52, %v792_v59  ;;  %v790_v0 = vmul.f32 0.2, %v654_v54  ;;  %v821_v36 = vsel %vm693_vm11, %v523_v49, %v757_v56 }
 0x12e   :  { %v1468_v1 = vpack.c.bf16 %v824_v62, %v823_v55  ;;  %v1548_v2 = vpack.c.bf16 %v856_v63, %v855_v60  ;;  %v822_v3 = vsel %vm694_vm15, %v526_v53, %v758_v61  ;;  %v853_v4 = vsel %vm725_vm14, %v651_v50, %v789_v57 }
 0x12f   :  { %v1463_v5 = vpack.c.bf16 %v822_v3, %v821_v36  ;;  %v854_v6 = vsel %vm726_vm0, %v654_v54, %v790_v0 }
 0x130   :  { %1564 = vst [vmem:[#allocation2 + $0x78] sm:$0xff] %v1468_v1   ;;  %1580 = vst [vmem:[#allocation2 + $0xf8] sm:$0xff] %v1548_v2   ;;  %v1543_v7 = vpack.c.bf16 %v854_v6, %v853_v4 }
 0x131   :  { %1563 = vst [vmem:[#allocation2 + $0x70] sm:$0xff] %v1463_v5  }
 0x132   :  { %1579 = vst [vmem:[#allocation2 + $0xf0] sm:$0xff] %v1543_v7  }
 0x133   :  { %1747 = shalt.err (!%p1744_p4)
}
 0x134   :  { %s1748_s5 = scalar_lea.hbm %s2017_s3, 4096 }
 0x135   :  { %p1749_p5 = scmp.ne.s32.totalorder %s2017_s3, %s1748_s5  ;;  %p1752_p6 = scmp.lt.u32.totalorder %s1748_s5, %s2017_s3 }
 0x137   :  { %p1754_p7 = pnand %p1752_p6, %p1749_p5 }
 0x139   :  { %1757 = shalt.err (!%p1754_p7)
}
 0x13a   :  { %s1761_s10 = smov 64   ;;  %s1762_s11 = smov 4  }
 0x13b   :  { %1188 = dma.vmem_to_hbm [thread:$0]  %s1183_s2, 4096, %s2017_s3, [#allocation3], %s1761_s10, %s1761_s10, %s1762_s11  }
 0x13c   :  { %1758 = dma.done.wait [#allocation3], 4096  }
 0x13d   :  { %1759 = vsyncadd [#allocation3], 4294963200 }
 0x13e   :  { %1192 = vsyncpa [#allocation3], 1 }

</bundles_post_ra>
